<compile_context>
chip_gen: v6e
topology: v6e:2x2x1
jax: 0.10.0
libtpu: 0.0.40
codegen_flags: <defaults>
</compile_context>

<pallas_src>
import functools

import jax
import jax.numpy as jnp
import numpy as np
from jax.experimental import pallas as pl
from jax.experimental.pallas import tpu as pltpu


def _round_up(x, m):
    return (x + m - 1) // m * m


def _build_banded_weight(weight, s, toh, n_parts):
    """Fold the nearest-upsample ROW phase + 3x3 row taps into one weight.

    weight : (Cout, Cin, 3, 3) PyTorch OIHW conv weight.
    Returns (Cout*toh, 3*n_parts*Cin*8) with
      row index  m = co * toh + oy_rel            (oy_rel = s*iy_rel + py)
      col index  k = ((b * n_parts + part) * Cin + ci) * 8 + rp
    where slab row r = 8*part + rp is the column-upsampled, zero-padded input
    row  iy0 + r  read by output row  s*(iy0 + iy_rel) + py  for column tap b.
    """
    cout, cin = weight.shape[0], weight.shape[1]
    sel = np.zeros((toh, 3, n_parts, 8), np.float32)
    for t in range(toh):
        iy_rel, py = divmod(t, s)
        for a in range(3):
            r = iy_rel + 1 + (py + a - 1) // s      # slab row read by row-tap a
            sel[t, a, r // 8, r % 8] += 1.0         # taps may coincide -> weights add
    sel = jnp.asarray(sel)
    wb = jnp.einsum("oiab,tapr->otbpir", weight.astype(jnp.float32), sel)
    return wb.reshape(cout * toh, 3 * n_parts * cin * 8)


def _upsample_conv_kernel(*refs, n_xrefs, n_parts, ow):
    # x refs : row-slab refs holding `n_parts` slabs of shape (Cin*8, OWP)
    #          (main path: 2 refs x 1 slab; fallback: 1 ref (n_parts, Cin*8, OWP)).
    # w_ref  : (Cout*TOH, 3*n_parts*Cin*8) banded phase-folded weight.
    # o_ref  : (Cout, TOH, OW) tile of the FINAL (N, Cout, OH, OW) output.
    x_refs = refs[:n_xrefs]
    w_ref = refs[n_xrefs]
    o_ref = refs[n_xrefs + 1]
    if n_xrefs == 1 and len(x_refs[0].shape) == 3:
        parts = [x_refs[0][i] for i in range(n_parts)]     # static major index
    else:
        parts = [r[...] for r in x_refs]
    # Three column taps = static lane slices (offsets 0/1/2) of the slabs.
    # Every piece is a multiple of 8 sublanes so the concat is plain stacking;
    # data volume here is input-sized (<< output), not the bottleneck.
    rhs = jnp.concatenate(
        [p[:, b:b + ow] for b in range(3) for p in parts], axis=0)   # (K, OW)
    # Single MXU matmul; accumulation stays inside the MXU in f32.
    acc = jnp.dot(w_ref[...], rhs, preferred_element_type=jnp.float32)
    o_ref[...] = acc.reshape(o_ref.shape).astype(o_ref.dtype)


def upsample_forward(x_nchw, weight, scale_factor=2, *,
                     compute_dtype=jnp.float32, out_dtype=jnp.float32):
    """Nearest-neighbour upsample by integer `scale_factor`, then 3x3 conv
    (stride=1, padding=1, bias=False).  x: (N, Cin, H, W); weight: (Cout, Cin, 3, 3)."""
    N, Cin, H, W = x_nchw.shape
    Cout = weight.shape[0]
    assert weight.shape[1] == Cin and weight.shape[2:] == (3, 3)
    s = int(scale_factor)
    assert s >= 1, "scale_factor must be a positive integer"
    OH, OW = s * H, s * W
    OWP = OW + 2

    if H % 8 == 0:
        # Main path: 8 input rows (s*8 output rows) per grid step; each step
        # reads two consecutive 8-row slabs (the 2nd supplies the +1/+2 halo).
        tr, n_xrefs, n_parts = 8, 2, 2
        gb = H // tr
        hrows = H + 8                     # gb + 1 slabs of 8 rows
    else:
        # Fallback for odd H: whole (small) image handled in one row step.
        tr, n_xrefs = H, 1
        gb = 1
        hrows = _round_up(H + 2, 8)
        n_parts = hrows // 8
    toh = s * tr
    hb = hrows // 8

    # ---- cheap XLA prologue (input-sized, << output traffic): column-upsample,
    # zero-pad, regroup rows into 8-row slabs with (channel, row) merged so the
    # kernel needs no in-slab reshapes.
    xcup = jnp.repeat(x_nchw, s, axis=3)                                  # (N,Cin,H,OW)
    xcup = jnp.pad(xcup, ((0, 0), (0, 0), (1, hrows - H - 1), (1, 1)))    # (N,Cin,HROWS,OWP)
    xslabs = (xcup.reshape(N, Cin, hb, 8, OWP)
                  .transpose(0, 2, 1, 3, 4)
                  .reshape(N, hb, Cin * 8, OWP))                          # (N,HB,Cin*8,OWP)

    wb = _build_banded_weight(weight, s, toh, n_parts)                    # (Cout*TOH, K)
    K = 3 * n_parts * Cin * 8

    if compute_dtype != jnp.float32:      # optional bf16 streaming (v6e/v7x)
        xslabs = xslabs.astype(compute_dtype)
        wb = wb.astype(compute_dtype)

    if n_xrefs == 2:
        x_specs = [
            pl.BlockSpec((None, None, Cin * 8, OWP), lambda n, qt: (n, qt, 0, 0)),
            pl.BlockSpec((None, None, Cin * 8, OWP), lambda n, qt: (n, qt + 1, 0, 0)),
        ]
        x_args = (xslabs, xslabs)
    else:
        x_specs = [pl.BlockSpec((None, hb, Cin * 8, OWP), lambda n, qt: (n, 0, 0, 0))]
        x_args = (xslabs,)
    w_spec = pl.BlockSpec((Cout * toh, K), lambda n, qt: (0, 0))   # resident, fetched once

    kernel = functools.partial(_upsample_conv_kernel, n_xrefs=n_xrefs,
                               n_parts=n_parts, ow=OW)

    flops = 2 * N * gb * (Cout * toh) * K * OW
    bytes_accessed = (n_xrefs * xslabs.size * xslabs.dtype.itemsize
                      + wb.size * wb.dtype.itemsize
                      + N * Cout * OH * OW * jnp.dtype(out_dtype).itemsize)

    return pl.pallas_call(
        kernel,
        out_shape=jax.ShapeDtypeStruct((N, Cout, OH, OW), out_dtype),
        grid_spec=pltpu.PrefetchScalarGridSpec(
            num_scalar_prefetch=0,
            grid=(N, gb),
            in_specs=x_specs + [w_spec],
            # Final layout directly: no phase-interleave / slice epilogue.
            out_specs=pl.BlockSpec((None, Cout, toh, OW),
                                   lambda n, qt: (n, 0, qt, 0)),
        ),
        compiler_params=pltpu.CompilerParams(
            dimension_semantics=("parallel", "parallel"),
            # <= ~48 MiB keeps headroom on v7x's 64 MiB VMEM while giving
            # v5e/v6e more than the 32 MiB scoped default.
            vmem_limit_bytes=48 * 1024 * 1024,
        ),
        cost_estimate=pl.CostEstimate(flops=int(flops), transcendentals=0,
                                      bytes_accessed=int(bytes_accessed)),
    )(*x_args, wb)


def _reference(x_nchw, weight, scale_factor=2):
    """Pure-JAX reference (interpolate nearest + conv) for the correctness check."""
    s = int(scale_factor)
    x = jnp.repeat(jnp.repeat(x_nchw, s, axis=2), s, axis=3)
    return jax.lax.conv_general_dilated(
        x, weight, window_strides=(1, 1), padding=((1, 1), (1, 1)),
        dimension_numbers=("NCHW", "OIHW", "NCHW"),
    )


if __name__ == "__main__":
    key = jax.random.PRNGKey(0)
    kx, kw = jax.random.split(key)

    n_channels, n_out = 4, 8
    x = jax.random.normal(kx, (2, n_channels, 16, 16), jnp.float32)

    # Deterministic Conv2d-style init (uniform in +/- 1/sqrt(fan_in)), bias=False.
    fan_in = n_channels * 3 * 3
    bound = (1.0 / fan_in) ** 0.5
    weight = jax.random.uniform(kw, (n_out, n_channels, 3, 3), jnp.float32,
                                minval=-bound, maxval=bound)

    fwd = jax.jit(functools.partial(upsample_forward, scale_factor=2))
    y = fwd(x, weight)
    jax.block_until_ready(y)

    y_ref = _reference(x, weight, scale_factor=2)
    assert y.shape == (2, n_out, 32, 32), y.shape
    max_err = float(jnp.max(jnp.abs(y - y_ref)))
    assert jnp.allclose(y, y_ref, atol=1e-4, rtol=1e-4), f"mismatch vs reference: {max_err}"

    print("KERNEL_OK")
</pallas_src>

<mosaic_0001>
module attributes {stable_mosaic.version = 11 : i64} {
  func.func @_upsample_conv_kernel(%arg0: i32, %arg1: i32, %arg2: memref<1x1x32x34xf32, #tpu.memory_space<vmem>>, %arg3: memref<1x1x32x34xf32, #tpu.memory_space<vmem>>, %arg4: memref<128x192xf32, #tpu.memory_space<vmem>>, %arg5: memref<1x8x16x32xf32, #tpu.memory_space<vmem>>) attributes {dimension_semantics = [#tpu.dimension_semantics<parallel>, #tpu.dimension_semantics<parallel>], iteration_bounds = array<i64: 2, 2>, scalar_prefetch = 0 : i64, scratch_operands = 0 : i64, tpu.core_type = #tpu.core_type<tc>, window_params = [{transform_indices = @transform_0, window_bounds = array<i64: 1, 1, 32, 34>}, {transform_indices = @transform_1, window_bounds = array<i64: 1, 1, 32, 34>}, {pipeline_mode = #tpu.pipeline_mode<synchronous>, transform_indices = @transform_2, window_bounds = array<i64: 128, 192>}, {transform_indices = @transform_3, window_bounds = array<i64: 1, 8, 16, 32>}]} {
    %c0 = arith.constant 0 : index
    %c0_0 = arith.constant 0 : index
    %c0_1 = arith.constant 0 : index
    %c0_2 = arith.constant 0 : index
    %0 = vector.load %arg2[%c0, %c0_0, %c0_1, %c0_2] : memref<1x1x32x34xf32, #tpu.memory_space<vmem>>, vector<1x1x32x34xf32>
    %1 = vector.shape_cast %0 : vector<1x1x32x34xf32> to vector<32x34xf32>
    %c0_3 = arith.constant 0 : index
    %c0_4 = arith.constant 0 : index
    %c0_5 = arith.constant 0 : index
    %c0_6 = arith.constant 0 : index
    %2 = vector.load %arg3[%c0_3, %c0_4, %c0_5, %c0_6] : memref<1x1x32x34xf32, #tpu.memory_space<vmem>>, vector<1x1x32x34xf32>
    %3 = vector.shape_cast %2 : vector<1x1x32x34xf32> to vector<32x34xf32>
    %4 = vector.extract_strided_slice %1 {offsets = [0, 0], sizes = [32, 32], strides = [1, 1]} : vector<32x34xf32> to vector<32x32xf32>
    %5 = vector.extract_strided_slice %3 {offsets = [0, 0], sizes = [32, 32], strides = [1, 1]} : vector<32x34xf32> to vector<32x32xf32>
    %6 = vector.extract_strided_slice %1 {offsets = [0, 1], sizes = [32, 32], strides = [1, 1]} : vector<32x34xf32> to vector<32x32xf32>
    %7 = vector.extract_strided_slice %3 {offsets = [0, 1], sizes = [32, 32], strides = [1, 1]} : vector<32x34xf32> to vector<32x32xf32>
    %8 = vector.extract_strided_slice %1 {offsets = [0, 2], sizes = [32, 32], strides = [1, 1]} : vector<32x34xf32> to vector<32x32xf32>
    %9 = vector.extract_strided_slice %3 {offsets = [0, 2], sizes = [32, 32], strides = [1, 1]} : vector<32x34xf32> to vector<32x32xf32>
    %10 = tpu.concatenate %4, %5, %6, %7, %8, %9 in 0 : vector<32x32xf32>, vector<32x32xf32>, vector<32x32xf32>, vector<32x32xf32>, vector<32x32xf32>, vector<32x32xf32> -> vector<192x32xf32>
    %c0_7 = arith.constant 0 : index
    %c0_8 = arith.constant 0 : index
    %11 = vector.load %arg4[%c0_7, %c0_8] : memref<128x192xf32, #tpu.memory_space<vmem>>, vector<128x192xf32>
    %cst = arith.constant dense<0.000000e+00> : vector<128x32xf32>
    %12 = tpu.matmul %11, %10, %cst {dimension_numbers = #tpu.dot_dimension_numbers<[1], [0], [0], [1], [0, 0, 1, 1], [], []>} : vector<128x192xf32>, vector<192x32xf32>, vector<128x32xf32> -> vector<128x32xf32>
    %13 = vector.shape_cast %12 : vector<128x32xf32> to vector<8x16x32xf32>
    %c0_9 = arith.constant 0 : index
    %c0_10 = arith.constant 0 : index
    %c0_11 = arith.constant 0 : index
    %c0_12 = arith.constant 0 : index
    %14 = vector.load %arg5[%c0_9, %c0_10, %c0_11, %c0_12] : memref<1x8x16x32xf32, #tpu.memory_space<vmem>>, vector<1x8x16x32xf32>
    %15 = vector.shape_cast %14 : vector<1x8x16x32xf32> to vector<8x16x32xf32>
    %16 = vector.shape_cast %13 : vector<8x16x32xf32> to vector<1x8x16x32xf32>
    tpu.vector_store %arg5[%c0_9, %c0_10, %c0_11, %c0_12], %16 {strides = array<i32>} : memref<1x8x16x32xf32, #tpu.memory_space<vmem>>, vector<1x8x16x32xf32>,
    return
  }
  func.func @transform_0(%arg0: i32, %arg1: i32) -> (i32, i32, i32, i32) {
    %c0_i32 = arith.constant 0 : i32
    %c0_i32_0 = arith.constant 0 : i32
    %c0_i32_1 = arith.constant 0 : i32
    return %arg0, %arg1, %c0_i32, %c0_i32_0 : i32, i32, i32, i32
  }
  func.func @transform_1(%arg0: i32, %arg1: i32) -> (i32, i32, i32, i32) {
    %c1_i32 = arith.constant 1 : i32
    %0 = arith.addi %arg1, %c1_i32 : i32
    %c0_i32 = arith.constant 0 : i32
    %c0_i32_0 = arith.constant 0 : i32
    %c0_i32_1 = arith.constant 0 : i32
    return %arg0, %0, %c0_i32, %c0_i32_0 : i32, i32, i32, i32
  }
  func.func @transform_2(%arg0: i32, %arg1: i32) -> (i32, i32) {
    %c0_i32 = arith.constant 0 : i32
    %c0_i32_0 = arith.constant 0 : i32
    %c0_i32_1 = arith.constant 0 : i32
    return %c0_i32, %c0_i32_0 : i32, i32
  }
  func.func @transform_3(%arg0: i32, %arg1: i32) -> (i32, i32, i32, i32) {
    %c0_i32 = arith.constant 0 : i32
    %c0_i32_0 = arith.constant 0 : i32
    %c0_i32_1 = arith.constant 0 : i32
    return %arg0, %c0_i32, %arg1, %c0_i32_0 : i32, i32, i32, i32
  }
}

</mosaic_0001>

<bundles_post_ra>
// kernel: upsample_forward.1
= control target key start
LH: loop header
LB: loop body
LE: loop exit
PB: predicated region body
PF: predicated region fallthrough
CT: control target
= control target key end

     0   :  { %8 = vsyncpa [#allocation3], 0  ;;  %s1334_s0 = inlined_call_operand.vmem [shape: f32[2,3,32,34], index: 0, kind: input, shape index: {}, may-alias: {0,1}]   ;;  %s1335_s1 = inlined_call_operand.vmem [shape: f32[2,3,32,34], index: 1, kind: input, shape index: {}, may-alias: {0,1}]   ;;  %s1336_s2 = inlined_call_operand.vmem [shape: f32[128,192], index: 2, kind: input, shape index: {}]   ;;  %s1337_s3 = inlined_call_operand.hbm [shape: f32[2,8,32,32], index: 3, kind: output, shape index: {}]  }
   0x1   :  { %10 = vsyncpa [#allocation3 + $0x1], 0  ;;  %s957_s12 = smov 0   ;;  %s959_s13 = smov 0  }
   0x2   :  { %s961_s14 = smov 0   ;;  %s963_s15 = smov 0  }
   0x3   :  { %s965_s16 = smov 0   ;;  %s967_s17 = smov 0  }
   0x4   :  { %s969_s18 = smov 0   ;;  %s971_s19 = smov 0  }
   0x5 LB: > { %s691_s20 = sadd.s32 4294967295, %s925_s19   ;;  %s692_s21 = sadd.s32 4294967294, %s925_s19   ;;  %s925_s19 = sphi %s971_s19, %s16_s19   ;;  %s921_s18 = sphi %s969_s18, %s1346_s18   ;;  %s917_s17 = sphi %s967_s17, %s1345_s17   ;;  %s913_s16 = sphi %s965_s16, %s1344_s16   ;;  %s909_s15 = sphi %s963_s15, %s1343_s15   ;;  %s905_s14 = sphi %s961_s14, %s1342_s14   ;;  %s901_s13 = sphi %s959_s13, %s1341_s13   ;;  %s897_s12 = sphi %s957_s12, %s1340_s12  }
   0x6   : > { %s25_s22 = sadd.s32 1, %s917_s17  ;;  %s28_s23 = sadd.s32 1, %s921_s18 }
   0x7   : > { %p26_p0 = scmp.ge.s32.totalorder %s25_s22, 2  ;;  %p126_p1 = scmp.ne.s32.totalorder %s905_s14, %s901_s13 }
   0x8   : > { %p127_p2 = scmp.eq.s32.totalorder %s691_s20, 3  ;;  %p132_p5 = scmp.ne.s32.totalorder %s901_s13, %s897_s12 }
   0x9   : > { %s1348_s22 = smov (%p26_p0, %s25_s22), 0  ;;  %s1350_s23 = smov (!%p26_p0, %s28_s23), %s921_s18 }
   0xa   : > { %s112_s24 = ssub.s32 %s917_s17, %s1348_s22  ;;  %p1008_p3 = por %p127_p2, %p126_p1 }
   0xb   : > { %p30_p4 = scmp.ge.s32.totalorder %s1350_s23, 2  ;;  %p133_p6 = scmp.eq.s32.totalorder %s692_s21, 3 }
   0xc   : > { %p695_p7 = scmp.ge.s32.totalorder %s925_s19, 1  ;;  %p180_p9 = scmp.lt.s32.totalorder %s925_s19, 5 }
   0xd   : > { %s1352_s23 = smov (%p30_p4, %s1350_s23), 0  ;;  %p1017_p8 = por %p133_p6, %p132_p5 }
   0xe   : > { %s111_s27 = ssub.s32 %s921_s18, %s1352_s23  ;;  %s116_s28 = sadd.s32 1, %s905_s14 }
   0xf   : > { %s113_s29 = sor.u32 %s112_s24, %s111_s27  ;;  %p181_p10 = pnand %p695_p7, %p180_p9 }
  0x10   : > { %p114_p11 = scmp.eq.s32.totalorder %s113_s29, 0  ;;  %p218_p12 = scmp.lt.s32.totalorder (!%p181_p10), %s913_s16, 1 }
  0x11   : > { %184 = sbr.rel (%p181_p10) target bundleno = 428 (0x1ac), region = 32  ;;  %s227_s4 = sadd.s32 (!%p181_p10), 1, %s909_s15 }
  0x12   : > { %s1026_s30 = scalar_select %p114_p11, %s905_s14, %s116_s28  }
  0x13   : > { %p230_p13 = scmp.lt.s32.totalorder (!%p181_p10), %s227_s4, 2  ;;  %p220_p0 = scmp.lt.s32.totalorder (!%p181_p10), %s909_s15, 2 }
  0x14   : > { %s928_s24 = smov (!%p181_p10), 127  }
  0x16   : > { %v927_v0 = vmov 0.0   ;;  %s219_s5 = scalar_select %p218_p12, %s913_s16, 1  ;;  %v304_v9 = vld [vmem:[%s1336_s2 + $0x8] sm:$0xff]  ;;  %vm335_vm0 = vcmask 523264   ;;  %v303_v27 = vld [vmem:[%s1336_s2] sm:$0xff]  ;;  %v306_v29 = vld [vmem:[%s1336_s2 + $0x18] sm:$0xff] }
  0x17   : > { %384 = vmatprep.subr.mxu0 %v927_v0  ;;  %723 = vmatprep.subr.mxu1 %v927_v0  ;;  %s1354_s4 = smov (!%p230_p13, %s227_s4), 2  ;;  %v320_v10 = vld [vmem:[%s1336_s2 + $0x88] sm:$0xff]  ;;  %v319_v28 = vld [vmem:[%s1336_s2 + $0x80] sm:$0xff]  ;;  %v322_v30 = vld [vmem:[%s1336_s2 + $0x98] sm:$0xff]  ;;  %vm529_vm1 = vcmask 261120  }
  0x18   : > { %s771_s6 = smul.u32 12, %s219_s5  ;;  %s699_s7 = sshll.u32 %s1354_s4, 2  ;;  %701 = vmatprep.mubr.msk.f32.mxu0 %vm335_vm0, %v304_v9  ;;  %709 = vmatprep.mubr.msk.f32.mxu1 %vm335_vm0, %v320_v10  ;;  %v305_v31 = vld [vmem:[%s1336_s2 + $0x10] sm:$0xff]  ;;  %v308_v33 = vld [vmem:[%s1336_s2 + $0x28] sm:$0xff]  ;;  %v307_v35 = vld [vmem:[%s1336_s2 + $0x20] sm:$0xff] }
  0x19   : > { %s221_s21 = scalar_select %p220_p0, %s909_s15, 2  ;;  %v321_v32 = vld [vmem:[%s1336_s2 + $0x90] sm:$0xff]  ;;  %v324_v34 = vld [vmem:[%s1336_s2 + $0xa8] sm:$0xff]  ;;  %v323_v36 = vld [vmem:[%s1336_s2 + $0xa0] sm:$0xff] }
  0x1a   : > { %s234_s8 = sadd.s32 %s771_s6, %s699_s7  ;;  %v310_v37 = vld [vmem:[%s1336_s2 + $0x38] sm:$0xff]  ;;  %v309_v39 = vld [vmem:[%s1336_s2 + $0x30] sm:$0xff]  ;;  %v312_v41 = vld [vmem:[%s1336_s2 + $0x48] sm:$0xff] }
  0x1b   : > { %s700_s9 = sshll.u32 %s234_s8, 3  ;;  %s697_s27 = sshll.u32 %s221_s21, 2  ;;  %v326_v38 = vld [vmem:[%s1336_s2 + $0xb8] sm:$0xff]  ;;  %v325_v40 = vld [vmem:[%s1336_s2 + $0xb0] sm:$0xff]  ;;  %v328_v42 = vld [vmem:[%s1336_s2 + $0xc8] sm:$0xff] }
  0x1c   : > { %s236_s20 = scalar_lea.vmem %s1335_s1, %s700_s9  ;;  %s224_s28 = sadd.s32 %s771_s6, %s697_s27  ;;  %v311_v43 = vld [vmem:[%s1336_s2 + $0x40] sm:$0xff]  ;;  %v314_v45 = vld [vmem:[%s1336_s2 + $0x58] sm:$0xff]  ;;  %v313_v47 = vld [vmem:[%s1336_s2 + $0x50] sm:$0xff] }
  0x1d   : > { %v1037_v1 = vld [vmem:[%s236_s20 + $0x18] sm:$0xff]  ;;  %v1039_v2 = vld [vmem:[%s236_s20 + $0x8] sm:$0xff]  ;;  %v1044_v3 = vld [vmem:[%s236_s20 + $0x10] sm:$0xff]  ;;  %s698_s29 = sshll.u32 %s224_s28, 3  ;;  %s929_s6 = smov 126  }
  0x1e   : > { %273 = vrot.lane.b32.xlu0 %v1037_v1, %s928_s24  ;;  %269 = vrot.lane.b32.xlu1 %v1039_v2, %s928_s24  ;;  %v1046_v4 = vld [vmem:[%s236_s20] sm:$0xff]  ;;  %s226_s7 = scalar_lea.vmem %s1334_s0, %s698_s29  ;;  %v330_v46 = vld [vmem:[%s1336_s2 + $0xd8] sm:$0xff]  ;;  %s215_s28 = sand.u32 1, %s901_s13  }
  0x1f   : > { %v1053_v5 = vld [vmem:[%s226_s7 + $0x18] sm:$0xff]  ;;  %v1055_v6 = vld [vmem:[%s226_s7 + $0x10] sm:$0xff]  ;;  %v1059_v7 = vld [vmem:[%s226_s7 + $0x8] sm:$0xff]  ;;  %s696_s29 = sshll.u32 %s215_s28, 7  ;;  %s547_s5 = scalar_lea.sflag [#allocation3], %s215_s28 }
  0x20   : > { %v1061_v8 = vld [vmem:[%s226_s7] sm:$0xff]  ;;  %v329_v48 = vld [vmem:[%s1336_s2 + $0xd0] sm:$0xff]  ;;  %v316_v49 = vld [vmem:[%s1336_s2 + $0x68] sm:$0xff]  ;;  %s1250_s4 = scalar_lea.vmem [#allocation2], %s696_s29 }
  0x21   : > { %v327_v44 = vld [vmem:[%s1336_s2 + $0xc0] sm:$0xff]  ;;  %v332_v50 = vld [vmem:[%s1336_s2 + $0xe8] sm:$0xff]  ;;  %v318_v53 = vld [vmem:[%s1336_s2 + $0x78] sm:$0xff] }
  0x22   : > { %271 = vrot.lane.b32.xlu0 %v1044_v3, %s928_s24  ;;  %267 = vrot.lane.b32.xlu1 %v1046_v4, %s928_s24  ;;  %v315_v51 = vld [vmem:[%s1336_s2 + $0x60] sm:$0xff]  ;;  %v334_v54 = vld [vmem:[%s1336_s2 + $0xf8] sm:$0xff] }
  0x23   : > { %v331_v52 = vld [vmem:[%s1336_s2 + $0xe0] sm:$0xff]  ;;  %v317_v55 = vld [vmem:[%s1336_s2 + $0x70] sm:$0xff] }
  0x24   : > { %v333_v56 = vld [vmem:[%s1336_s2 + $0xf0] sm:$0xff] }
  0x26   : > { %257 = vrot.lane.b32.xlu0 %v1053_v5, %s928_s24  ;;  %255 = vrot.lane.b32.xlu1 %v1055_v6, %s928_s24 }
  0x2a   : > { %253 = vrot.lane.b32.xlu0 %v1059_v7, %s928_s24  ;;  %251 = vrot.lane.b32.xlu1 %v1061_v8, %s928_s24 }
  0x2e   : > { %297 = vrot.lane.b32.xlu0 %v1037_v1, %s929_s6  ;;  %295 = vrot.lane.b32.xlu1 %v1044_v3, %s929_s6 }
  0x32   : > { %293 = vrot.lane.b32.xlu0 %v1039_v2, %s929_s6  ;;  %291 = vrot.lane.b32.xlu1 %v1046_v4, %s929_s6 }
  0x36   : > { %285 = vrot.lane.b32.xlu0 %v1053_v5, %s929_s6  ;;  %283 = vrot.lane.b32.xlu1 %v1055_v6, %s929_s6 }
  0x3a   : > { %281 = vrot.lane.b32.xlu0 %v1059_v7, %s929_s6  ;;  %279 = vrot.lane.b32.xlu1 %v1061_v8, %s929_s6 }
  0x90   : > { %v274_v11 = vpop.permute.xlu0 %273  ;;  %v270_v12 = vpop.permute.xlu1 %269 }
  0x91   : > { %385 = vmatpush1.msra.mxu0 %v274_v11  ;;  %747 = vmatpush1.msra.mxu1 %v274_v11 }
  0x92   : > { %386 = vmatprep.subr.mxu0 %v927_v0  ;;  %724 = vmatprep.subr.mxu1 %v927_v0 }
  0x94   : > { %v272_v13 = vpop.permute.xlu0 %271  ;;  %v268_v14 = vpop.permute.xlu1 %267 }
  0x95   : > { %387 = vmatpush1.msra.mxu0 %v272_v13  ;;  %748 = vmatpush1.msra.mxu1 %v272_v13 }
  0x96   : > { %388 = vmatprep.subr.mxu0 %v927_v0  ;;  %725 = vmatprep.subr.mxu1 %v927_v0 }
  0x97   : > { %389 = vmatpush1.msra.mxu0 %v270_v12  ;;  %749 = vmatpush1.msra.mxu1 %v270_v12 }
  0x98   : > { %390 = vmatprep.subr.mxu0 %v927_v0  ;;  %726 = vmatprep.subr.mxu1 %v927_v0  ;;  %v258_v15 = vpop.permute.xlu0 %257  ;;  %v256_v16 = vpop.permute.xlu1 %255 }
  0x99   : > { %391 = vmatpush1.msra.mxu0 %v268_v14  ;;  %750 = vmatpush1.msra.mxu1 %v268_v14 }
  0x9a   : > { %392 = vmatprep.subr.mxu0 %v927_v0  ;;  %727 = vmatprep.subr.mxu1 %v927_v0 }
  0x9b   : > { %393 = vmatpush1.msra.mxu0 %v258_v15  ;;  %751 = vmatpush1.msra.mxu1 %v258_v15 }
  0x9c   : > { %394 = vmatprep.subr.mxu0 %v927_v0  ;;  %728 = vmatprep.subr.mxu1 %v927_v0  ;;  %v254_v17 = vpop.permute.xlu0 %253  ;;  %v252_v18 = vpop.permute.xlu1 %251 }
  0x9d   : > { %395 = vmatpush1.msra.mxu0 %v256_v16  ;;  %752 = vmatpush1.msra.mxu1 %v256_v16 }
  0x9e   : > { %396 = vmatprep.subr.mxu0 %v927_v0  ;;  %729 = vmatprep.subr.mxu1 %v927_v0 }
  0x9f   : > { %397 = vmatpush1.msra.mxu0 %v254_v17  ;;  %753 = vmatpush1.msra.mxu1 %v254_v17 }
  0xa0   : > { %398 = vmatprep.subr.mxu0 %v927_v0  ;;  %730 = vmatprep.subr.mxu1 %v927_v0  ;;  %v298_v19 = vpop.permute.xlu0 %297  ;;  %v296_v20 = vpop.permute.xlu1 %295 }
  0xa1   : > { %399 = vmatpush1.msra.mxu0 %v252_v18  ;;  %754 = vmatpush1.msra.mxu1 %v252_v18 }
  0xa2   : > { %400 = vmatprep.subr.mxu0 %v927_v0  ;;  %731 = vmatprep.subr.mxu1 %v927_v0 }
  0xa3   : > { %401 = vmatpush1.msra.mxu0 %v1037_v1  ;;  %755 = vmatpush1.msra.mxu1 %v1037_v1 }
  0xa4   : > { %402 = vmatprep.subr.mxu0 %v927_v0  ;;  %732 = vmatprep.subr.mxu1 %v927_v0  ;;  %v294_v21 = vpop.permute.xlu0 %293  ;;  %v292_v22 = vpop.permute.xlu1 %291 }
  0xa5   : > { %403 = vmatpush1.msra.mxu0 %v1044_v3  ;;  %756 = vmatpush1.msra.mxu1 %v1044_v3 }
  0xa6   : > { %404 = vmatprep.subr.mxu0 %v927_v0  ;;  %733 = vmatprep.subr.mxu1 %v927_v0 }
  0xa7   : > { %405 = vmatpush1.msra.mxu0 %v1039_v2  ;;  %757 = vmatpush1.msra.mxu1 %v1039_v2 }
  0xa8   : > { %406 = vmatprep.subr.mxu0 %v927_v0  ;;  %734 = vmatprep.subr.mxu1 %v927_v0  ;;  %v286_v23 = vpop.permute.xlu0 %285  ;;  %v284_v24 = vpop.permute.xlu1 %283 }
  0xa9   : > { %407 = vmatpush1.msra.mxu0 %v1046_v4  ;;  %758 = vmatpush1.msra.mxu1 %v1046_v4 }
  0xaa   : > { %408 = vmatprep.subr.mxu0 %v927_v0  ;;  %735 = vmatprep.subr.mxu1 %v927_v0 }
  0xab   : > { %409 = vmatpush1.msra.mxu0 %v1053_v5  ;;  %759 = vmatpush1.msra.mxu1 %v1053_v5 }
  0xac   : > { %410 = vmatprep.subr.mxu0 %v927_v0  ;;  %736 = vmatprep.subr.mxu1 %v927_v0  ;;  %v282_v25 = vpop.permute.xlu0 %281  ;;  %v280_v26 = vpop.permute.xlu1 %279 }
  0xad   : > { %411 = vmatpush1.msra.mxu0 %v1055_v6  ;;  %760 = vmatpush1.msra.mxu1 %v1055_v6 }
  0xae   : > { %412 = vmatprep.subr.mxu0 %v927_v0  ;;  %737 = vmatprep.subr.mxu1 %v927_v0 }
  0xaf   : > { %413 = vmatpush1.msra.mxu0 %v1059_v7  ;;  %761 = vmatpush1.msra.mxu1 %v1059_v7 }
  0xb0   : > { %414 = vmatprep.subr.mxu0 %v927_v0  ;;  %738 = vmatprep.subr.mxu1 %v927_v0 }
  0xb1   : > { %415 = vmatpush1.msra.mxu0 %v1061_v8  ;;  %762 = vmatpush1.msra.mxu1 %v1061_v8 }
  0xb2   : > { %432 = vmatprep.subr.mxu0 %v927_v0  ;;  %739 = vmatprep.subr.mxu1 %v927_v0 }
  0xb3   : > { %433 = vmatpush2.msra.mxu0 %v298_v19  ;;  %763 = vmatpush2.msra.mxu1 %v298_v19 }
  0xb4   : > { %434 = vmatprep.subr.mxu0 %v927_v0  ;;  %740 = vmatprep.subr.mxu1 %v927_v0 }
  0xb5   : > { %435 = vmatpush2.msra.mxu0 %v296_v20  ;;  %764 = vmatpush2.msra.mxu1 %v296_v20 }
  0xb6   : > { %436 = vmatprep.subr.mxu0 %v927_v0  ;;  %741 = vmatprep.subr.mxu1 %v927_v0 }
  0xb7   : > { %437 = vmatpush2.msra.mxu0 %v294_v21  ;;  %765 = vmatpush2.msra.mxu1 %v294_v21 }
  0xb8   : > { %438 = vmatprep.subr.mxu0 %v927_v0  ;;  %742 = vmatprep.subr.mxu1 %v927_v0 }
  0xb9   : > { %439 = vmatpush2.msra.mxu0 %v292_v22  ;;  %766 = vmatpush2.msra.mxu1 %v292_v22 }
  0xba   : > { %440 = vmatprep.subr.mxu0 %v927_v0  ;;  %743 = vmatprep.subr.mxu1 %v927_v0 }
  0xbb   : > { %441 = vmatpush2.msra.mxu0 %v286_v23  ;;  %767 = vmatpush2.msra.mxu1 %v286_v23 }
  0xbc   : > { %442 = vmatprep.subr.mxu0 %v927_v0  ;;  %744 = vmatprep.subr.mxu1 %v927_v0 }
  0xbd   : > { %443 = vmatpush2.msra.mxu0 %v284_v24  ;;  %768 = vmatpush2.msra.mxu1 %v284_v24 }
  0xbe   : > { %444 = vmatprep.subr.mxu0 %v927_v0  ;;  %745 = vmatprep.subr.mxu1 %v927_v0 }
  0xbf   : > { %445 = vmatpush2.msra.mxu0 %v282_v25  ;;  %769 = vmatpush2.msra.mxu1 %v282_v25 }
  0xc0   : > { %446 = vmatprep.subr.mxu0 %v927_v0  ;;  %746 = vmatprep.subr.mxu1 %v927_v0 }
  0xc1   : > { %447 = vmatpush2.msra.mxu0 %v280_v26  ;;  %770 = vmatpush2.msra.mxu1 %v280_v26 }
  0xc2   : > { %449 = vmatmul.mubr.f32.vlgmr.msra.gmra.mxu0 %v303_v27  ;;  %489 = vmatmul.mubr.f32.vlgmr.msra.gmra.mxu1 %v319_v28 }
  0xc3   : > { %702 = vmatprep.mubr.msk.f32.mxu0 %vm335_vm0, %v306_v29  ;;  %710 = vmatprep.mubr.msk.f32.mxu1 %vm335_vm0, %v322_v30 }
  0xc6   : > { %454 = vmatmul.mubr.f32.gmra.mxu0 %v305_v31  ;;  %494 = vmatmul.mubr.f32.gmra.mxu1 %v321_v32 }
  0xc7   : > { %703 = vmatprep.mubr.msk.f32.mxu0 %vm335_vm0, %v308_v33  ;;  %711 = vmatprep.mubr.msk.f32.mxu1 %vm335_vm0, %v324_v34 }
  0xca   : > { %459 = vmatmul.mubr.f32.gmra.mxu0 %v307_v35  ;;  %499 = vmatmul.mubr.f32.gmra.mxu1 %v323_v36 }
  0xcb   : > { %704 = vmatprep.mubr.msk.f32.mxu0 %vm335_vm0, %v310_v37  ;;  %712 = vmatprep.mubr.msk.f32.mxu1 %vm335_vm0, %v326_v38 }
  0xce   : > { %464 = vmatmul.mubr.f32.gmra.mxu0 %v309_v39  ;;  %504 = vmatmul.mubr.f32.gmra.mxu1 %v325_v40 }
  0xcf   : > { %705 = vmatprep.mubr.msk.f32.mxu0 %vm335_vm0, %v312_v41  ;;  %713 = vmatprep.mubr.msk.f32.mxu1 %vm335_vm0, %v328_v42 }
  0xd2   : > { %469 = vmatmul.mubr.f32.gmra.mxu0 %v311_v43  ;;  %509 = vmatmul.mubr.f32.gmra.mxu1 %v327_v44 }
  0xd3   : > { %706 = vmatprep.mubr.msk.f32.mxu0 %vm335_vm0, %v314_v45  ;;  %714 = vmatprep.mubr.msk.f32.mxu1 %vm335_vm0, %v330_v46 }
  0xd6   : > { %474 = vmatmul.mubr.f32.gmra.mxu0 %v313_v47  ;;  %514 = vmatmul.mubr.f32.gmra.mxu1 %v329_v48 }
  0xd7   : > { %707 = vmatprep.mubr.msk.f32.mxu0 %vm335_vm0, %v316_v49  ;;  %715 = vmatprep.mubr.msk.f32.mxu1 %vm335_vm0, %v332_v50 }
  0xda   : > { %479 = vmatmul.mubr.f32.gmra.mxu0 %v315_v51  ;;  %519 = vmatmul.mubr.f32.gmra.mxu1 %v331_v52 }
  0xdb   : > { %708 = vmatprep.mubr.msk.f32.mxu0 %vm335_vm0, %v318_v53  ;;  %716 = vmatprep.mubr.msk.f32.mxu1 %vm335_vm0, %v334_v54 }
  0xde   : > { %484 = vmatmul.mubr.f32.gmra.mxu0 %v317_v55  ;;  %524 = vmatmul.mubr.f32.gmra.mxu1 %v333_v56 }
 0x182   : > { %v450_v57 = vpop.f32.mrf.mxu0  ;;  %v490_v58 = vpop.f32.mrf.mxu1 }
 0x183   : > { %530 = vst.msk [vmem:[%s1250_s4] sm:$0xff] %vm529_vm1, %v450_v57  ;;  %538 = vst.msk [vmem:[%s1250_s4 + $0x40] sm:$0xff] %vm529_vm1, %v490_v58 }
 0x184   : > { %v452_v59 = vpop.f32.mrf.mxu0  ;;  %v492_v60 = vpop.f32.mrf.mxu1 }
 0x186   : > { %v455_v61 = vpop.f32.mrf.mxu0  ;;  %v495_v62 = vpop.f32.mrf.mxu1 }
 0x187   : > { %531 = vst.msk [vmem:[%s1250_s4 + $0x8] sm:$0xff] %vm529_vm1, %v455_v61  ;;  %539 = vst.msk [vmem:[%s1250_s4 + $0x48] sm:$0xff] %vm529_vm1, %v495_v62 }
 0x188   : > { %v457_v63 = vpop.f32.mrf.mxu0  ;;  %v497_v0 = vpop.f32.mrf.mxu1 }
 0x18a   : > { %v460_v1 = vpop.f32.mrf.mxu0  ;;  %v500_v2 = vpop.f32.mrf.mxu1 }
 0x18b   : > { %532 = vst.msk [vmem:[%s1250_s4 + $0x10] sm:$0xff] %vm529_vm1, %v460_v1  ;;  %540 = vst.msk [vmem:[%s1250_s4 + $0x50] sm:$0xff] %vm529_vm1, %v500_v2 }
 0x18c   : > { %v462_v3 = vpop.f32.mrf.mxu0  ;;  %v502_v4 = vpop.f32.mrf.mxu1 }
 0x18e   : > { %v465_v5 = vpop.f32.mrf.mxu0  ;;  %v505_v6 = vpop.f32.mrf.mxu1 }
 0x18f   : > { %533 = vst.msk [vmem:[%s1250_s4 + $0x18] sm:$0xff] %vm529_vm1, %v465_v5  ;;  %541 = vst.msk [vmem:[%s1250_s4 + $0x58] sm:$0xff] %vm529_vm1, %v505_v6 }
 0x190   : > { %v467_v7 = vpop.f32.mrf.mxu0  ;;  %v507_v8 = vpop.f32.mrf.mxu1 }
 0x192   : > { %v470_v9 = vpop.f32.mrf.mxu0  ;;  %v510_v10 = vpop.f32.mrf.mxu1 }
 0x193   : > { %534 = vst.msk [vmem:[%s1250_s4 + $0x20] sm:$0xff] %vm529_vm1, %v470_v9  ;;  %542 = vst.msk [vmem:[%s1250_s4 + $0x60] sm:$0xff] %vm529_vm1, %v510_v10 }
 0x194   : > { %v472_v11 = vpop.f32.mrf.mxu0  ;;  %v512_v12 = vpop.f32.mrf.mxu1 }
 0x196   : > { %v475_v13 = vpop.f32.mrf.mxu0  ;;  %v515_v14 = vpop.f32.mrf.mxu1 }
 0x197   : > { %535 = vst.msk [vmem:[%s1250_s4 + $0x28] sm:$0xff] %vm529_vm1, %v475_v13  ;;  %543 = vst.msk [vmem:[%s1250_s4 + $0x68] sm:$0xff] %vm529_vm1, %v515_v14 }
 0x198   : > { %v477_v15 = vpop.f32.mrf.mxu0  ;;  %v517_v16 = vpop.f32.mrf.mxu1 }
 0x19a   : > { %v480_v17 = vpop.f32.mrf.mxu0  ;;  %v520_v18 = vpop.f32.mrf.mxu1 }
 0x19b   : > { %536 = vst.msk [vmem:[%s1250_s4 + $0x30] sm:$0xff] %vm529_vm1, %v480_v17  ;;  %544 = vst.msk [vmem:[%s1250_s4 + $0x70] sm:$0xff] %vm529_vm1, %v520_v18 }
 0x19c   : > { %v482_v19 = vpop.f32.mrf.mxu0  ;;  %v522_v20 = vpop.f32.mrf.mxu1 }
 0x19e   : > { %v485_v21 = vpop.f32.mrf.mxu0  ;;  %v525_v22 = vpop.f32.mrf.mxu1 }
 0x19f   : > { %537 = vst.msk [vmem:[%s1250_s4 + $0x38] sm:$0xff] %vm529_vm1, %v485_v21  ;;  %545 = vst.msk [vmem:[%s1250_s4 + $0x78] sm:$0xff] %vm529_vm1, %v525_v22 }
 0x1a0   : > { %v487_v23 = vpop.f32.mrf.mxu0  ;;  %v527_v24 = vpop.f32.mrf.mxu1 }
 0x1a1   : > { %s718_s7 = sshll.u32 %s909_s15, 1  ;;  %s719_s6 = sshll.u32 %s913_s16, 5 }
 0x1a2   : > { %s559_s8 = sadd.s32 %s719_s6, %s718_s7  ;;  %s572_s9 = sshll.u32 %s1250_s4, 4  ;;  %s573_s9 = int_to_ptr.vmem [resolvable:$true] %s572_s9 }
 0x1a3   : > { %s720_s10 = sshll.u32 %s559_s8, 7  ;;  %s930_s24 = smov 256  }
 0x1a4   : > { %s561_s21 = scalar_lea.hbm %s1337_s3, %s720_s10  ;;  %772 = sst [smem:[#allocation5]] (%p1008_p3), %s930_s24 }
 0x1a5   : > { %s931_s27 = smov 512   ;;  %s932_s28 = smov 2  }
 0x1a6   : > { %773 = sst [smem:[#allocation5 + $0x1]] (%p1008_p3), %s931_s27  ;;  %s933_s15 = smov 128  }
 0x1a7   : > { %774 = sst [smem:[#allocation5 + $0x2]] (%p1008_p3), %s932_s28  ;;  %s934_s16 = smov 8  }
 0x1a8   : > { %775 = sst [smem:[#allocation5 + $0x3]] (%p1008_p3), %s933_s15  ;;  %s935_s29 = smov 131072  }
 0x1a9   : > { %776 = sst [smem:[#allocation5 + $0x4]] (%p1008_p3), %s933_s15  ;;  %s936_s4 = smov 0  }
 0x1aa   : > { %777 = sst [smem:[#allocation5 + $0x5]] (%p1008_p3), %s934_s16 }
 0x1ab   : > { %778 = dma.general (%p1008_p3), %s573_s9, 2048, %s561_s21, %s547_s5, %s935_s29, [#allocation5], %s936_s4, 0  }
 0x1ac PF: > { %p784_p1 = scmp.ge.s32.totalorder %s925_s19, 2  ;;  %s600_s7 = sand.u32 1, %s897_s12  }
 0x1ad   : > { %s601_s6 = scalar_lea.sflag [#allocation3], %s600_s7 }
 0x1ae   : > { %p781_p2 = pnand %p784_p1, %p1017_p8 }
 0x1b0   : > { %p782_p4 = pneg %p781_p2 }
 0x1b2   : > { %892 = dma.done.wait (%p782_p4), %s601_s6, 2048  }
 0x1b3   : > { %894 = vsyncadd (%p782_p4), %s601_s6, 4294965248  ;;  %s16_s19 = sadd.s32 1, %s925_s19   ;;  %s1340_s12 = smov %s901_s13 }
 0x1b4   : > { %p13_p5 = scmp.ge.s32.totalorder %s16_s19, 6   ;;  %s1341_s13 = smov %s905_s14 }
 0x1b5   : > { %s1342_s14 = smov %s1026_s30  ;;  %s1343_s15 = smov %s917_s17 }
 0x1b6   : > { %s1344_s16 = smov %s921_s18  ;;  %s1345_s17 = smov %s1348_s22 }
 0x1b7   : > { %s1346_s18 = smov %s1352_s23  ;;  %15 = sbr.rel (!%p13_p5) target bundleno = 5 (0x5), region = 75 }
 0x1bc   :  { %606 = vsyncpa [#allocation3], 1 }
 0x1bd   :  { %608 = vsyncpa [#allocation3 + $0x1], 1 }

</bundles_post_ra>
